<compile_context>
chip_gen: v7x
topology: tpu7x:2x2x1
jax: 0.10.0
libtpu: 0.0.40
codegen_flags: <defaults>
</compile_context>

<pallas_src>
import jax
import jax.numpy as jnp
from jax.experimental import pallas as pl
from jax.experimental.pallas import tpu as pltpu

# ---------------- problem sizes (small, consistent with the module) ----------
OUTPUT_DIM = 32   # vocab size
EMB_DIM    = 16
HID_DIM    = 32
N_LAYERS   = 2
SRC_LEN    = 8
BATCH      = 2    # NOTE: batching decode streams to B >= 8 fills f32 sublanes;
                  # kept at 2 to match the module's example shapes.

EMB_PAD = 32      # E (=16) zero-padded to a full 32-lane block

# --- packed "wide" buffer (columns = 4*HID_DIM = 128 lanes), row offsets ----
OFF_WE0 = 0                       # (EMB_PAD, 4H)  W_ih0 emb columns (padded)
OFF_WW0 = OFF_WE0 + EMB_PAD       # (H, 4H)        W_ih0 weighted columns
OFF_WH0 = OFF_WW0 + HID_DIM       # (H, 4H)        W_hh0
OFF_WI1 = OFF_WH0 + HID_DIM       # (H, 4H)        W_ih1
OFF_WH1 = OFF_WI1 + HID_DIM       # (H, 4H)        W_hh1
OFF_B0  = OFF_WH1 + HID_DIM       # (1, 4H)        b_ih0 + b_hh0
OFF_B1  = OFF_B0 + 8              # (1, 4H)        b_ih1 + b_hh1
WIDE_ROWS = OFF_B1 + 8            # 176

# --- packed "narrow" buffer (columns = 32 lanes), row offsets ---------------
NARROW_W  = 32
OFF_WAH   = 0                     # (H, H)   attention proj of hidden
OFF_WAE   = OFF_WAH + HID_DIM     # (H, H)   attention proj of encoder
OFF_WFC_H = OFF_WAE + HID_DIM     # (H, O)   fc_out columns for h1
OFF_WFC_W = OFF_WFC_H + HID_DIM   # (H, O)   fc_out columns for weighted
OFF_WFC_E = OFF_WFC_W + HID_DIM   # (EMB_PAD, O) fc_out columns for emb (padded)
OFF_EMB   = OFF_WFC_E + EMB_PAD   # (O, EMB_PAD) embedding table (padded)
OFF_BA    = OFF_EMB + OUTPUT_DIM  # (1, H)   attention bias
OFF_V     = OFF_BA + 8            # (1, H)   attention score vector
OFF_BFC   = OFF_V + 8             # (1, O)   fc_out bias
NARROW_ROWS = OFF_BFC + 8         # 216


def decoder_kernel(
    tok_ref,     # SMEM (B,) int32   input tokens
    h_ref,       # VMEM (L, B, H)    LSTM hidden state
    c_ref,       # VMEM (L, B, H)    LSTM cell state
    enc_ref,     # VMEM (B, S, H)    encoder outputs
    wide_ref,    # VMEM (WIDE_ROWS, 4H)     packed LSTM weights/biases
    narrow_ref,  # VMEM (NARROW_ROWS, 32)   packed attn/fc/emb weights/biases
    pred_ref,    # out: (B, O)
    hout_ref,    # out: (L, B, H)
    cout_ref,    # out: (L, B, H)
):
    H, O, EP = HID_DIM, OUTPUT_DIM, EMB_PAD
    B = h_ref.shape[1]
    H4 = 4 * H

    # ---- attention / embedding weights (loaded once, reused per batch row) --
    wae     = narrow_ref[OFF_WAE:OFF_WAE + H, :]        # (H, H)
    ba      = narrow_ref[OFF_BA:OFF_BA + 1, :]          # (1, H)
    v       = narrow_ref[OFF_V:OFF_V + 1, :]            # (1, H)
    emb_tab = narrow_ref[OFF_EMB:OFF_EMB + O, :]        # (O, EP)

    h_top  = h_ref[N_LAYERS - 1]                         # (B, H)
    h_proj = jnp.dot(h_top, narrow_ref[OFF_WAH:OFF_WAH + H, :],
                     preferred_element_type=jnp.float32)  # (B, H)

    lane_o = jax.lax.broadcasted_iota(jnp.int32, (1, O), 1)

    emb_rows = []
    w_rows = []
    for b in range(B):  # B is tiny and static; fully unrolled, all 2-D math
        # embedding gather as a one-hot matmul on the MXU (no XLA gather)
        oh = (lane_o == tok_ref[b]).astype(jnp.float32)                     # (1, O)
        emb_rows.append(jnp.dot(oh, emb_tab,
                                preferred_element_type=jnp.float32))        # (1, EP)

        # additive (Bahdanau) attention for batch row b, no reshapes
        enc_b  = enc_ref[b]                                                 # (S, H)
        e_proj = jnp.dot(enc_b, wae, preferred_element_type=jnp.float32)    # (S, H)
        energy = jnp.tanh(e_proj + h_proj[b:b + 1, :] + ba)                 # (S, H)
        scores = jnp.sum(energy * v, axis=-1, keepdims=True)                # (S, 1)
        m  = jnp.max(scores, axis=0, keepdims=True)
        ex = jnp.exp(scores - m)
        attn = ex / jnp.sum(ex, axis=0, keepdims=True)                      # (S, 1)
        w_rows.append(jnp.sum(attn * enc_b, axis=0, keepdims=True))         # (1, H)

    emb      = jnp.concatenate(emb_rows, axis=0)         # (B, EP) lanes >= E are 0
    weighted = jnp.concatenate(w_rows, axis=0)           # (B, H)

    # ---------------- 2-layer LSTM, single time step -------------------------
    h0p, h1p = h_ref[0], h_ref[1]
    c0p, c1p = c_ref[0], c_ref[1]

    # fused gate activation over the full 128-lane (B, 4H) tile:
    # lanes [2H, 3H) -> tanh (g gate), everything else -> sigmoid (i, f, o)
    lane_g = jax.lax.broadcasted_iota(jnp.int32, (B, H4), 1)
    is_g = jnp.logical_and(lane_g >= 2 * H, lane_g < 3 * H)

    def fused_act(pre):
        return jnp.where(is_g, jnp.tanh(pre), jax.nn.sigmoid(pre))

    # layer 0: rnn_input = [emb | weighted] realized as split partial matmuls
    g0 = fused_act(
        jnp.dot(emb, wide_ref[OFF_WE0:OFF_WE0 + EP, :],
                preferred_element_type=jnp.float32)
        + jnp.dot(weighted, wide_ref[OFF_WW0:OFF_WW0 + H, :],
                  preferred_element_type=jnp.float32)
        + jnp.dot(h0p, wide_ref[OFF_WH0:OFF_WH0 + H, :],
                  preferred_element_type=jnp.float32)
        + wide_ref[OFF_B0:OFF_B0 + 1, :])
    i0, f0, gg0, o0 = (g0[:, 0:H], g0[:, H:2 * H], g0[:, 2 * H:3 * H], g0[:, 3 * H:])
    c0n = f0 * c0p + i0 * gg0
    h0n = o0 * jnp.tanh(c0n)

    # layer 1
    g1 = fused_act(
        jnp.dot(h0n, wide_ref[OFF_WI1:OFF_WI1 + H, :],
                preferred_element_type=jnp.float32)
        + jnp.dot(h1p, wide_ref[OFF_WH1:OFF_WH1 + H, :],
                  preferred_element_type=jnp.float32)
        + wide_ref[OFF_B1:OFF_B1 + 1, :])
    i1, f1, gg1, o1 = (g1[:, 0:H], g1[:, H:2 * H], g1[:, 2 * H:3 * H], g1[:, 3 * H:])
    c1n = f1 * c1p + i1 * gg1
    h1n = o1 * jnp.tanh(c1n)

    # ---------------- output projection: fc([h1 | weighted | emb]) -----------
    pred_ref[...] = (
        jnp.dot(h1n, narrow_ref[OFF_WFC_H:OFF_WFC_H + H, :],
                preferred_element_type=jnp.float32)
        + jnp.dot(weighted, narrow_ref[OFF_WFC_W:OFF_WFC_W + H, :],
                  preferred_element_type=jnp.float32)
        + jnp.dot(emb, narrow_ref[OFF_WFC_E:OFF_WFC_E + EP, :],
                  preferred_element_type=jnp.float32)
        + narrow_ref[OFF_BFC:OFF_BFC + 1, :])

    hout_ref[0] = h0n
    hout_ref[1] = h1n
    cout_ref[0] = c0n
    cout_ref[1] = c1n


def init_params(key):
    ks = jax.random.split(key, 14)
    s = 0.1
    p = {}
    p["emb_table"] = jax.random.normal(ks[0], (OUTPUT_DIM, EMB_DIM), jnp.float32) * s
    # attention: Linear(2H -> H) plus score vector v (H -> 1)
    p["W_attn"] = jax.random.normal(ks[1], (HID_DIM, 2 * HID_DIM), jnp.float32) * s
    p["b_attn"] = jax.random.normal(ks[2], (HID_DIM,), jnp.float32) * s
    p["v_attn"] = jax.random.normal(ks[3], (HID_DIM,), jnp.float32) * s
    # LSTM layer 0: input dim = EMB_DIM + HID_DIM
    p["W_ih0"] = jax.random.normal(ks[4], (4 * HID_DIM, EMB_DIM + HID_DIM), jnp.float32) * s
    p["W_hh0"] = jax.random.normal(ks[5], (4 * HID_DIM, HID_DIM), jnp.float32) * s
    p["b_ih0"] = jax.random.normal(ks[6], (4 * HID_DIM,), jnp.float32) * s
    p["b_hh0"] = jax.random.normal(ks[7], (4 * HID_DIM,), jnp.float32) * s
    # LSTM layer 1: input dim = HID_DIM
    p["W_ih1"] = jax.random.normal(ks[8], (4 * HID_DIM, HID_DIM), jnp.float32) * s
    p["W_hh1"] = jax.random.normal(ks[9], (4 * HID_DIM, HID_DIM), jnp.float32) * s
    p["b_ih1"] = jax.random.normal(ks[10], (4 * HID_DIM,), jnp.float32) * s
    p["b_hh1"] = jax.random.normal(ks[11], (4 * HID_DIM,), jnp.float32) * s
    # fc_out: Linear(E + 2H -> O)
    p["W_fc"] = jax.random.normal(ks[12], (OUTPUT_DIM, EMB_DIM + 2 * HID_DIM), jnp.float32) * s
    p["b_fc"] = jax.random.normal(ks[13], (OUTPUT_DIM,), jnp.float32) * s
    return p


def pack_params(p):
    """One-time weight packing (x @ W form, gate-column split, bias fusion).

    Called once; the two packed buffers stay resident across decode steps so
    the per-step path is a single pallas_call with 6 operands.
    """
    H, E, O = HID_DIM, EMB_DIM, OUTPUT_DIM
    f32 = jnp.float32

    wide = jnp.zeros((WIDE_ROWS, 4 * H), f32)
    wide = wide.at[OFF_WE0:OFF_WE0 + E].set(p["W_ih0"][:, :E].T)       # emb cols (padded)
    wide = wide.at[OFF_WW0:OFF_WW0 + H].set(p["W_ih0"][:, E:].T)       # weighted cols
    wide = wide.at[OFF_WH0:OFF_WH0 + H].set(p["W_hh0"].T)
    wide = wide.at[OFF_WI1:OFF_WI1 + H].set(p["W_ih1"].T)
    wide = wide.at[OFF_WH1:OFF_WH1 + H].set(p["W_hh1"].T)
    wide = wide.at[OFF_B0].set(p["b_ih0"] + p["b_hh0"])
    wide = wide.at[OFF_B1].set(p["b_ih1"] + p["b_hh1"])

    narrow = jnp.zeros((NARROW_ROWS, NARROW_W), f32)
    narrow = narrow.at[OFF_WAH:OFF_WAH + H].set(p["W_attn"][:, :H].T)          # hidden part
    narrow = narrow.at[OFF_WAE:OFF_WAE + H].set(p["W_attn"][:, H:].T)          # encoder part
    narrow = narrow.at[OFF_WFC_H:OFF_WFC_H + H].set(p["W_fc"][:, :H].T)        # h1 cols
    narrow = narrow.at[OFF_WFC_W:OFF_WFC_W + H].set(p["W_fc"][:, H:2 * H].T)   # weighted cols
    narrow = narrow.at[OFF_WFC_E:OFF_WFC_E + E].set(p["W_fc"][:, 2 * H:].T)    # emb cols (padded)
    narrow = narrow.at[OFF_EMB:OFF_EMB + O, :E].set(p["emb_table"])            # embedding (padded)
    narrow = narrow.at[OFF_BA].set(p["b_attn"])
    narrow = narrow.at[OFF_V].set(p["v_attn"])
    narrow = narrow.at[OFF_BFC].set(p["b_fc"])

    return {"wide": wide, "narrow": narrow}


@jax.jit
def decoder_forward(packed, input_tokens, hidden, cell, encoder_outputs):
    B = input_tokens.shape[0]
    L = hidden.shape[0]
    H, O = HID_DIM, OUTPUT_DIM

    vmem = pl.BlockSpec(memory_space=pltpu.MemorySpace.VMEM)
    smem = pl.BlockSpec(memory_space=pltpu.MemorySpace.SMEM)

    pred, h_out, c_out = pl.pallas_call(
        decoder_kernel,
        out_shape=(
            jax.ShapeDtypeStruct((B, O), jnp.float32),
            jax.ShapeDtypeStruct((L, B, H), jnp.float32),
            jax.ShapeDtypeStruct((L, B, H), jnp.float32),
        ),
        in_specs=[smem, vmem, vmem, vmem, vmem, vmem],
        out_specs=(vmem, vmem, vmem),
    )(input_tokens.astype(jnp.int32), hidden, cell, encoder_outputs,
      packed["wide"], packed["narrow"])
    return pred, h_out, c_out


def decoder_forward_ref(params, input_tokens, hidden, cell, encoder_outputs):
    """Pure-JAX reference (same math, same raw weights)."""
    H = HID_DIM
    emb = params["emb_table"][input_tokens]
    h_top = hidden[-1]
    W_attn, b_attn, v = params["W_attn"], params["b_attn"], params["v_attn"]
    cat = jnp.concatenate(
        [jnp.broadcast_to(h_top[:, None, :], encoder_outputs.shape), encoder_outputs], axis=-1)
    energy = jnp.tanh(jnp.einsum("bsk,hk->bsh", cat, W_attn) + b_attn)
    scores = jnp.einsum("bsh,h->bs", energy, v)
    a = jax.nn.softmax(scores, axis=-1)
    weighted = jnp.einsum("bs,bsh->bh", a, encoder_outputs)

    def lstm_step(x, hp, cp, Wih, Whh, bih, bhh):
        g = x @ Wih.T + bih + hp @ Whh.T + bhh
        i, f, gg, o = (jax.nn.sigmoid(g[:, :H]), jax.nn.sigmoid(g[:, H:2 * H]),
                       jnp.tanh(g[:, 2 * H:3 * H]), jax.nn.sigmoid(g[:, 3 * H:]))
        cn = f * cp + i * gg
        return o * jnp.tanh(cn), cn

    x0 = jnp.concatenate([emb, weighted], axis=1)
    h0, c0 = lstm_step(x0, hidden[0], cell[0], params["W_ih0"], params["W_hh0"],
                       params["b_ih0"], params["b_hh0"])
    h1, c1 = lstm_step(h0, hidden[1], cell[1], params["W_ih1"], params["W_hh1"],
                       params["b_ih1"], params["b_hh1"])
    feat = jnp.concatenate([h1, weighted, emb], axis=1)
    pred = feat @ params["W_fc"].T + params["b_fc"]
    return pred, jnp.stack([h0, h1]), jnp.stack([c0, c1])


if __name__ == "__main__":
    key = jax.random.PRNGKey(0)
    kp, k1, k2, k3, k4 = jax.random.split(key, 5)
    params = init_params(kp)
    packed = pack_params(params)   # one-time packing; resident across decode steps

    input_tokens = jax.random.randint(k1, (BATCH,), 0, OUTPUT_DIM)               # (B,)
    hidden = jax.random.normal(k2, (N_LAYERS, BATCH, HID_DIM), jnp.float32)      # (L, B, H)
    cell = jax.random.normal(k3, (N_LAYERS, BATCH, HID_DIM), jnp.float32)        # (L, B, H)
    encoder_outputs = jax.random.normal(k4, (BATCH, SRC_LEN, HID_DIM), jnp.float32)  # (B, S, H)

    pred, h_out, c_out = decoder_forward(packed, input_tokens, hidden, cell, encoder_outputs)
    jax.block_until_ready((pred, h_out, c_out))

    pred_r, h_r, c_r = decoder_forward_ref(params, input_tokens, hidden, cell, encoder_outputs)
    assert pred.shape == (BATCH, OUTPUT_DIM)
    assert h_out.shape == (N_LAYERS, BATCH, HID_DIM)
    assert c_out.shape == (N_LAYERS, BATCH, HID_DIM)
    assert jnp.allclose(pred, pred_r, atol=1e-4, rtol=1e-4)
    assert jnp.allclose(h_out, h_r, atol=1e-4, rtol=1e-4)
    assert jnp.allclose(c_out, c_r, atol=1e-4, rtol=1e-4)

    print("KERNEL_OK")
</pallas_src>

<mosaic_0001>
module attributes {stable_mosaic.version = 11 : i64} {
  func.func @decoder_kernel(%arg0: memref<2xi32, #tpu.memory_space<smem>>, %arg1: memref<2x2x32xf32, #tpu.memory_space<vmem>>, %arg2: memref<2x2x32xf32, #tpu.memory_space<vmem>>, %arg3: memref<2x8x32xf32, #tpu.memory_space<vmem>>, %arg4: memref<176x128xf32, #tpu.memory_space<vmem>>, %arg5: memref<216x32xf32, #tpu.memory_space<vmem>>, %arg6: memref<2x32xf32, #tpu.memory_space<vmem>>, %arg7: memref<2x2x32xf32, #tpu.memory_space<vmem>>, %arg8: memref<2x2x32xf32, #tpu.memory_space<vmem>>) attributes {dimension_semantics = [], scalar_prefetch = 0 : i64, scratch_operands = 0 : i64, tpu.core_type = #tpu.core_type<tc>} {
    %c32 = arith.constant 32 : index
    %c0 = arith.constant 0 : index
    %0 = vector.load %arg5[%c32, %c0] : memref<216x32xf32, #tpu.memory_space<vmem>>, vector<32x32xf32>
    %c192 = arith.constant 192 : index
    %c0_0 = arith.constant 0 : index
    %1 = vector.load %arg5[%c192, %c0_0] : memref<216x32xf32, #tpu.memory_space<vmem>>, vector<1x32xf32>
    %c200 = arith.constant 200 : index
    %c0_1 = arith.constant 0 : index
    %2 = vector.load %arg5[%c200, %c0_1] : memref<216x32xf32, #tpu.memory_space<vmem>>, vector<1x32xf32>
    %c160 = arith.constant 160 : index
    %c0_2 = arith.constant 0 : index
    %3 = vector.load %arg5[%c160, %c0_2] : memref<216x32xf32, #tpu.memory_space<vmem>>, vector<32x32xf32>
    %c1 = arith.constant 1 : index
    %c0_3 = arith.constant 0 : index
    %c0_4 = arith.constant 0 : index
    %4 = vector.load %arg1[%c1, %c0_3, %c0_4] : memref<2x2x32xf32, #tpu.memory_space<vmem>>, vector<1x2x32xf32>
    %5 = vector.shape_cast %4 : vector<1x2x32xf32> to vector<2x32xf32>
    %c0_5 = arith.constant 0 : index
    %c0_6 = arith.constant 0 : index
    %6 = vector.load %arg5[%c0_5, %c0_6] : memref<216x32xf32, #tpu.memory_space<vmem>>, vector<32x32xf32>
    %cst = arith.constant dense<0.000000e+00> : vector<2x32xf32>
    %7 = tpu.matmul %5, %6, %cst {dimension_numbers = #tpu.dot_dimension_numbers<[1], [0], [0], [1], [0, 0, 1, 1], [], []>} : vector<2x32xf32>, vector<32x32xf32>, vector<2x32xf32> -> vector<2x32xf32>
    %8 = tpu.iota {dimensions = array<i32: 1>} : vector<1x32xi32>
    %c0_7 = arith.constant 0 : index
    %9 = memref.load %arg0[%c0_7] : memref<2xi32, #tpu.memory_space<smem>>
    %10 = vector.broadcast %9 : i32 to vector<1x32xi32>
    %11 = arith.cmpi eq, %8, %10 : vector<1x32xi32>
    %12 = arith.extui %11 : vector<1x32xi1> to vector<1x32xi32>
    %13 = arith.sitofp %12 : vector<1x32xi32> to vector<1x32xf32>
    %cst_8 = arith.constant dense<0.000000e+00> : vector<1x32xf32>
    %14 = tpu.matmul %13, %3, %cst_8 {dimension_numbers = #tpu.dot_dimension_numbers<[1], [0], [0], [1], [0, 0, 1, 1], [], []>} : vector<1x32xf32>, vector<32x32xf32>, vector<1x32xf32> -> vector<1x32xf32>
    %c0_9 = arith.constant 0 : index
    %c0_10 = arith.constant 0 : index
    %c0_11 = arith.constant 0 : index
    %15 = vector.load %arg3[%c0_9, %c0_10, %c0_11] : memref<2x8x32xf32, #tpu.memory_space<vmem>>, vector<1x8x32xf32>
    %16 = vector.shape_cast %15 : vector<1x8x32xf32> to vector<8x32xf32>
    %cst_12 = arith.constant dense<0.000000e+00> : vector<8x32xf32>
    %17 = tpu.matmul %16, %0, %cst_12 {dimension_numbers = #tpu.dot_dimension_numbers<[1], [0], [0], [1], [0, 0, 1, 1], [], []>} : vector<8x32xf32>, vector<32x32xf32>, vector<8x32xf32> -> vector<8x32xf32>
    %18 = vector.extract_strided_slice %7 {offsets = [0, 0], sizes = [1, 32], strides = [1, 1]} : vector<2x32xf32> to vector<1x32xf32>
    %19 = vector.broadcast %18 : vector<1x32xf32> to vector<8x32xf32>
    %20 = arith.addf %17, %19 : vector<8x32xf32>
    %21 = vector.broadcast %1 : vector<1x32xf32> to vector<8x32xf32>
    %22 = arith.addf %20, %21 : vector<8x32xf32>
    %23 = math.tanh %22 : vector<8x32xf32>
    %24 = vector.broadcast %2 : vector<1x32xf32> to vector<8x32xf32>
    %25 = arith.mulf %23, %24 : vector<8x32xf32>
    %cst_13 = arith.constant dense<0.000000e+00> : vector<8xf32>
    %26 = vector.multi_reduction <add>, %25, %cst_13 [1] : vector<8x32xf32> to vector<8xf32>
    %27 = vector.shape_cast %26 : vector<8xf32> to vector<8x1xf32>
    %cst_14 = arith.constant dense<0xFF800000> : vector<1xf32>
    %28 = vector.multi_reduction <maximumf>, %27, %cst_14 [0] : vector<8x1xf32> to vector<1xf32>
    %29 = vector.shape_cast %28 : vector<1xf32> to vector<1x1xf32>
    %30 = vector.broadcast %29 : vector<1x1xf32> to vector<8x1xf32>
    %31 = arith.subf %27, %30 : vector<8x1xf32>
    %32 = math.exp %31 : vector<8x1xf32>
    %cst_15 = arith.constant dense<0.000000e+00> : vector<1xf32>
    %33 = vector.multi_reduction <add>, %32, %cst_15 [0] : vector<8x1xf32> to vector<1xf32>
    %34 = vector.shape_cast %33 : vector<1xf32> to vector<1x1xf32>
    %35 = vector.broadcast %34 : vector<1x1xf32> to vector<8x1xf32>
    %36 = arith.divf %32, %35 : vector<8x1xf32>
    %37 = vector.broadcast %36 : vector<8x1xf32> to vector<8x32xf32>
    %38 = arith.mulf %37, %16 : vector<8x32xf32>
    %cst_16 = arith.constant dense<0.000000e+00> : vector<32xf32>
    %39 = vector.multi_reduction <add>, %38, %cst_16 [0] : vector<8x32xf32> to vector<32xf32>
    %40 = vector.shape_cast %39 : vector<32xf32> to vector<1x32xf32>
    %c1_17 = arith.constant 1 : index
    %41 = memref.load %arg0[%c1_17] : memref<2xi32, #tpu.memory_space<smem>>
    %42 = vector.broadcast %41 : i32 to vector<1x32xi32>
    %43 = arith.cmpi eq, %8, %42 : vector<1x32xi32>
    %44 = arith.extui %43 : vector<1x32xi1> to vector<1x32xi32>
    %45 = arith.sitofp %44 : vector<1x32xi32> to vector<1x32xf32>
    %cst_18 = arith.constant dense<0.000000e+00> : vector<1x32xf32>
    %46 = tpu.matmul %45, %3, %cst_18 {dimension_numbers = #tpu.dot_dimension_numbers<[1], [0], [0], [1], [0, 0, 1, 1], [], []>} : vector<1x32xf32>, vector<32x32xf32>, vector<1x32xf32> -> vector<1x32xf32>
    %c1_19 = arith.constant 1 : index
    %c0_20 = arith.constant 0 : index
    %c0_21 = arith.constant 0 : index
    %47 = vector.load %arg3[%c1_19, %c0_20, %c0_21] : memref<2x8x32xf32, #tpu.memory_space<vmem>>, vector<1x8x32xf32>
    %48 = vector.shape_cast %47 : vector<1x8x32xf32> to vector<8x32xf32>
    %cst_22 = arith.constant dense<0.000000e+00> : vector<8x32xf32>
    %49 = tpu.matmul %48, %0, %cst_22 {dimension_numbers = #tpu.dot_dimension_numbers<[1], [0], [0], [1], [0, 0, 1, 1], [], []>} : vector<8x32xf32>, vector<32x32xf32>, vector<8x32xf32> -> vector<8x32xf32>
    %50 = vector.extract_strided_slice %7 {offsets = [1, 0], sizes = [1, 32], strides = [1, 1]} : vector<2x32xf32> to vector<1x32xf32>
    %51 = vector.broadcast %50 : vector<1x32xf32> to vector<8x32xf32>
    %52 = arith.addf %49, %51 : vector<8x32xf32>
    %53 = vector.broadcast %1 : vector<1x32xf32> to vector<8x32xf32>
    %54 = arith.addf %52, %53 : vector<8x32xf32>
    %55 = math.tanh %54 : vector<8x32xf32>
    %56 = vector.broadcast %2 : vector<1x32xf32> to vector<8x32xf32>
    %57 = arith.mulf %55, %56 : vector<8x32xf32>
    %cst_23 = arith.constant dense<0.000000e+00> : vector<8xf32>
    %58 = vector.multi_reduction <add>, %57, %cst_23 [1] : vector<8x32xf32> to vector<8xf32>
    %59 = vector.shape_cast %58 : vector<8xf32> to vector<8x1xf32>
    %cst_24 = arith.constant dense<0xFF800000> : vector<1xf32>
    %60 = vector.multi_reduction <maximumf>, %59, %cst_24 [0] : vector<8x1xf32> to vector<1xf32>
    %61 = vector.shape_cast %60 : vector<1xf32> to vector<1x1xf32>
    %62 = vector.broadcast %61 : vector<1x1xf32> to vector<8x1xf32>
    %63 = arith.subf %59, %62 : vector<8x1xf32>
    %64 = math.exp %63 : vector<8x1xf32>
    %cst_25 = arith.constant dense<0.000000e+00> : vector<1xf32>
    %65 = vector.multi_reduction <add>, %64, %cst_25 [0] : vector<8x1xf32> to vector<1xf32>
    %66 = vector.shape_cast %65 : vector<1xf32> to vector<1x1xf32>
    %67 = vector.broadcast %66 : vector<1x1xf32> to vector<8x1xf32>
    %68 = arith.divf %64, %67 : vector<8x1xf32>
    %69 = vector.broadcast %68 : vector<8x1xf32> to vector<8x32xf32>
    %70 = arith.mulf %69, %48 : vector<8x32xf32>
    %cst_26 = arith.constant dense<0.000000e+00> : vector<32xf32>
    %71 = vector.multi_reduction <add>, %70, %cst_26 [0] : vector<8x32xf32> to vector<32xf32>
    %72 = vector.shape_cast %71 : vector<32xf32> to vector<1x32xf32>
    %73 = tpu.concatenate %14, %46 in 0 : vector<1x32xf32>, vector<1x32xf32> -> vector<2x32xf32>
    %74 = tpu.concatenate %40, %72 in 0 : vector<1x32xf32>, vector<1x32xf32> -> vector<2x32xf32>
    %c0_27 = arith.constant 0 : index
    %c0_28 = arith.constant 0 : index
    %c0_29 = arith.constant 0 : index
    %75 = vector.load %arg1[%c0_27, %c0_28, %c0_29] : memref<2x2x32xf32, #tpu.memory_space<vmem>>, vector<1x2x32xf32>
    %76 = vector.shape_cast %75 : vector<1x2x32xf32> to vector<2x32xf32>
    %c1_30 = arith.constant 1 : index
    %c0_31 = arith.constant 0 : index
    %c0_32 = arith.constant 0 : index
    %77 = vector.load %arg1[%c1_30, %c0_31, %c0_32] : memref<2x2x32xf32, #tpu.memory_space<vmem>>, vector<1x2x32xf32>
    %78 = vector.shape_cast %77 : vector<1x2x32xf32> to vector<2x32xf32>
    %c0_33 = arith.constant 0 : index
    %c0_34 = arith.constant 0 : index
    %c0_35 = arith.constant 0 : index
    %79 = vector.load %arg2[%c0_33, %c0_34, %c0_35] : memref<2x2x32xf32, #tpu.memory_space<vmem>>, vector<1x2x32xf32>
    %80 = vector.shape_cast %79 : vector<1x2x32xf32> to vector<2x32xf32>
    %c1_36 = arith.constant 1 : index
    %c0_37 = arith.constant 0 : index
    %c0_38 = arith.constant 0 : index
    %81 = vector.load %arg2[%c1_36, %c0_37, %c0_38] : memref<2x2x32xf32, #tpu.memory_space<vmem>>, vector<1x2x32xf32>
    %82 = vector.shape_cast %81 : vector<1x2x32xf32> to vector<2x32xf32>
    %83 = tpu.iota {dimensions = array<i32: 1>} : vector<2x128xi32>
    %c64_i32 = arith.constant 64 : i32
    %84 = vector.broadcast %c64_i32 : i32 to vector<2x128xi32>
    %85 = arith.cmpi sge, %83, %84 : vector<2x128xi32>
    %c96_i32 = arith.constant 96 : i32
    %86 = vector.broadcast %c96_i32 : i32 to vector<2x128xi32>
    %87 = arith.cmpi slt, %83, %86 : vector<2x128xi32>
    %88 = arith.andi %85, %87 : vector<2x128xi1>
    %c0_39 = arith.constant 0 : index
    %c0_40 = arith.constant 0 : index
    %89 = vector.load %arg4[%c0_39, %c0_40] : memref<176x128xf32, #tpu.memory_space<vmem>>, vector<32x128xf32>
    %cst_41 = arith.constant dense<0.000000e+00> : vector<2x128xf32>
    %90 = tpu.matmul %73, %89, %cst_41 {dimension_numbers = #tpu.dot_dimension_numbers<[1], [0], [0], [1], [0, 0, 1, 1], [], []>} : vector<2x32xf32>, vector<32x128xf32>, vector<2x128xf32> -> vector<2x128xf32>
    %c32_42 = arith.constant 32 : index
    %c0_43 = arith.constant 0 : index
    %91 = vector.load %arg4[%c32_42, %c0_43] : memref<176x128xf32, #tpu.memory_space<vmem>>, vector<32x128xf32>
    %cst_44 = arith.constant dense<0.000000e+00> : vector<2x128xf32>
    %92 = tpu.matmul %74, %91, %cst_44 {dimension_numbers = #tpu.dot_dimension_numbers<[1], [0], [0], [1], [0, 0, 1, 1], [], []>} : vector<2x32xf32>, vector<32x128xf32>, vector<2x128xf32> -> vector<2x128xf32>
    %93 = arith.addf %90, %92 : vector<2x128xf32>
    %c64 = arith.constant 64 : index
    %c0_45 = arith.constant 0 : index
    %94 = vector.load %arg4[%c64, %c0_45] : memref<176x128xf32, #tpu.memory_space<vmem>>, vector<32x128xf32>
    %cst_46 = arith.constant dense<0.000000e+00> : vector<2x128xf32>
    %95 = tpu.matmul %76, %94, %cst_46 {dimension_numbers = #tpu.dot_dimension_numbers<[1], [0], [0], [1], [0, 0, 1, 1], [], []>} : vector<2x32xf32>, vector<32x128xf32>, vector<2x128xf32> -> vector<2x128xf32>
    %96 = arith.addf %93, %95 : vector<2x128xf32>
    %c160_47 = arith.constant 160 : index
    %c0_48 = arith.constant 0 : index
    %97 = vector.load %arg4[%c160_47, %c0_48] : memref<176x128xf32, #tpu.memory_space<vmem>>, vector<1x128xf32>
    %98 = vector.broadcast %97 : vector<1x128xf32> to vector<2x128xf32>
    %99 = arith.addf %96, %98 : vector<2x128xf32>
    %100 = math.tanh %99 : vector<2x128xf32>
    %101 = arith.negf %99 : vector<2x128xf32>
    %102 = math.exp %101 : vector<2x128xf32>
    %cst_49 = arith.constant 1.000000e+00 : f32
    %103 = vector.broadcast %cst_49 : f32 to vector<2x128xf32>
    %104 = arith.addf %103, %102 : vector<2x128xf32>
    %105 = arith.divf %103, %104 : vector<2x128xf32>
    %106 = arith.select %88, %100, %105 : vector<2x128xi1>, vector<2x128xf32>
    %107 = vector.extract_strided_slice %106 {offsets = [0, 0], sizes = [2, 32], strides = [1, 1]} : vector<2x128xf32> to vector<2x32xf32>
    %108 = vector.extract_strided_slice %106 {offsets = [0, 32], sizes = [2, 32], strides = [1, 1]} : vector<2x128xf32> to vector<2x32xf32>
    %109 = vector.extract_strided_slice %106 {offsets = [0, 64], sizes = [2, 32], strides = [1, 1]} : vector<2x128xf32> to vector<2x32xf32>
    %110 = vector.extract_strided_slice %106 {offsets = [0, 96], sizes = [2, 32], strides = [1, 1]} : vector<2x128xf32> to vector<2x32xf32>
    %111 = arith.mulf %108, %80 : vector<2x32xf32>
    %112 = arith.mulf %107, %109 : vector<2x32xf32>
    %113 = arith.addf %111, %112 : vector<2x32xf32>
    %114 = math.tanh %113 : vector<2x32xf32>
    %115 = arith.mulf %110, %114 : vector<2x32xf32>
    %c96 = arith.constant 96 : index
    %c0_50 = arith.constant 0 : index
    %116 = vector.load %arg4[%c96, %c0_50] : memref<176x128xf32, #tpu.memory_space<vmem>>, vector<32x128xf32>
    %cst_51 = arith.constant dense<0.000000e+00> : vector<2x128xf32>
    %117 = tpu.matmul %115, %116, %cst_51 {dimension_numbers = #tpu.dot_dimension_numbers<[1], [0], [0], [1], [0, 0, 1, 1], [], []>} : vector<2x32xf32>, vector<32x128xf32>, vector<2x128xf32> -> vector<2x128xf32>
    %c128 = arith.constant 128 : index
    %c0_52 = arith.constant 0 : index
    %118 = vector.load %arg4[%c128, %c0_52] : memref<176x128xf32, #tpu.memory_space<vmem>>, vector<32x128xf32>
    %cst_53 = arith.constant dense<0.000000e+00> : vector<2x128xf32>
    %119 = tpu.matmul %78, %118, %cst_53 {dimension_numbers = #tpu.dot_dimension_numbers<[1], [0], [0], [1], [0, 0, 1, 1], [], []>} : vector<2x32xf32>, vector<32x128xf32>, vector<2x128xf32> -> vector<2x128xf32>
    %120 = arith.addf %117, %119 : vector<2x128xf32>
    %c168 = arith.constant 168 : index
    %c0_54 = arith.constant 0 : index
    %121 = vector.load %arg4[%c168, %c0_54] : memref<176x128xf32, #tpu.memory_space<vmem>>, vector<1x128xf32>
    %122 = vector.broadcast %121 : vector<1x128xf32> to vector<2x128xf32>
    %123 = arith.addf %120, %122 : vector<2x128xf32>
    %124 = math.tanh %123 : vector<2x128xf32>
    %125 = arith.negf %123 : vector<2x128xf32>
    %126 = math.exp %125 : vector<2x128xf32>
    %cst_55 = arith.constant 1.000000e+00 : f32
    %127 = vector.broadcast %cst_55 : f32 to vector<2x128xf32>
    %128 = arith.addf %127, %126 : vector<2x128xf32>
    %129 = arith.divf %127, %128 : vector<2x128xf32>
    %130 = arith.select %88, %124, %129 : vector<2x128xi1>, vector<2x128xf32>
    %131 = vector.extract_strided_slice %130 {offsets = [0, 0], sizes = [2, 32], strides = [1, 1]} : vector<2x128xf32> to vector<2x32xf32>
    %132 = vector.extract_strided_slice %130 {offsets = [0, 32], sizes = [2, 32], strides = [1, 1]} : vector<2x128xf32> to vector<2x32xf32>
    %133 = vector.extract_strided_slice %130 {offsets = [0, 64], sizes = [2, 32], strides = [1, 1]} : vector<2x128xf32> to vector<2x32xf32>
    %134 = vector.extract_strided_slice %130 {offsets = [0, 96], sizes = [2, 32], strides = [1, 1]} : vector<2x128xf32> to vector<2x32xf32>
    %135 = arith.mulf %132, %82 : vector<2x32xf32>
    %136 = arith.mulf %131, %133 : vector<2x32xf32>
    %137 = arith.addf %135, %136 : vector<2x32xf32>
    %138 = math.tanh %137 : vector<2x32xf32>
    %139 = arith.mulf %134, %138 : vector<2x32xf32>
    %c64_56 = arith.constant 64 : index
    %c0_57 = arith.constant 0 : index
    %140 = vector.load %arg5[%c64_56, %c0_57] : memref<216x32xf32, #tpu.memory_space<vmem>>, vector<32x32xf32>
    %cst_58 = arith.constant dense<0.000000e+00> : vector<2x32xf32>
    %141 = tpu.matmul %139, %140, %cst_58 {dimension_numbers = #tpu.dot_dimension_numbers<[1], [0], [0], [1], [0, 0, 1, 1], [], []>} : vector<2x32xf32>, vector<32x32xf32>, vector<2x32xf32> -> vector<2x32xf32>
    %c96_59 = arith.constant 96 : index
    %c0_60 = arith.constant 0 : index
    %142 = vector.load %arg5[%c96_59, %c0_60] : memref<216x32xf32, #tpu.memory_space<vmem>>, vector<32x32xf32>
    %cst_61 = arith.constant dense<0.000000e+00> : vector<2x32xf32>
    %143 = tpu.matmul %74, %142, %cst_61 {dimension_numbers = #tpu.dot_dimension_numbers<[1], [0], [0], [1], [0, 0, 1, 1], [], []>} : vector<2x32xf32>, vector<32x32xf32>, vector<2x32xf32> -> vector<2x32xf32>
    %144 = arith.addf %141, %143 : vector<2x32xf32>
    %c128_62 = arith.constant 128 : index
    %c0_63 = arith.constant 0 : index
    %145 = vector.load %arg5[%c128_62, %c0_63] : memref<216x32xf32, #tpu.memory_space<vmem>>, vector<32x32xf32>
    %cst_64 = arith.constant dense<0.000000e+00> : vector<2x32xf32>
    %146 = tpu.matmul %73, %145, %cst_64 {dimension_numbers = #tpu.dot_dimension_numbers<[1], [0], [0], [1], [0, 0, 1, 1], [], []>} : vector<2x32xf32>, vector<32x32xf32>, vector<2x32xf32> -> vector<2x32xf32>
    %147 = arith.addf %144, %146 : vector<2x32xf32>
    %c208 = arith.constant 208 : index
    %c0_65 = arith.constant 0 : index
    %148 = vector.load %arg5[%c208, %c0_65] : memref<216x32xf32, #tpu.memory_space<vmem>>, vector<1x32xf32>
    %149 = vector.broadcast %148 : vector<1x32xf32> to vector<2x32xf32>
    %150 = arith.addf %147, %149 : vector<2x32xf32>
    %c0_66 = arith.constant 0 : index
    %c0_67 = arith.constant 0 : index
    %151 = vector.load %arg6[%c0_66, %c0_67] : memref<2x32xf32, #tpu.memory_space<vmem>>, vector<2x32xf32>
    tpu.vector_store %arg6[%c0_66, %c0_67], %150 {strides = array<i32>} : memref<2x32xf32, #tpu.memory_space<vmem>>, vector<2x32xf32>,
    %c0_68 = arith.constant 0 : index
    %c0_69 = arith.constant 0 : index
    %c0_70 = arith.constant 0 : index
    %152 = vector.load %arg7[%c0_68, %c0_69, %c0_70] : memref<2x2x32xf32, #tpu.memory_space<vmem>>, vector<1x2x32xf32>
    %153 = vector.shape_cast %152 : vector<1x2x32xf32> to vector<2x32xf32>
    %154 = vector.shape_cast %115 : vector<2x32xf32> to vector<1x2x32xf32>
    tpu.vector_store %arg7[%c0_68, %c0_69, %c0_70], %154 {strides = array<i32>} : memref<2x2x32xf32, #tpu.memory_space<vmem>>, vector<1x2x32xf32>,
    %c1_71 = arith.constant 1 : index
    %c0_72 = arith.constant 0 : index
    %c0_73 = arith.constant 0 : index
    %155 = vector.load %arg7[%c1_71, %c0_72, %c0_73] : memref<2x2x32xf32, #tpu.memory_space<vmem>>, vector<1x2x32xf32>
    %156 = vector.shape_cast %155 : vector<1x2x32xf32> to vector<2x32xf32>
    %157 = vector.shape_cast %139 : vector<2x32xf32> to vector<1x2x32xf32>
    tpu.vector_store %arg7[%c1_71, %c0_72, %c0_73], %157 {strides = array<i32>} : memref<2x2x32xf32, #tpu.memory_space<vmem>>, vector<1x2x32xf32>,
    %c0_74 = arith.constant 0 : index
    %c0_75 = arith.constant 0 : index
    %c0_76 = arith.constant 0 : index
    %158 = vector.load %arg8[%c0_74, %c0_75, %c0_76] : memref<2x2x32xf32, #tpu.memory_space<vmem>>, vector<1x2x32xf32>
    %159 = vector.shape_cast %158 : vector<1x2x32xf32> to vector<2x32xf32>
    %160 = vector.shape_cast %113 : vector<2x32xf32> to vector<1x2x32xf32>
    tpu.vector_store %arg8[%c0_74, %c0_75, %c0_76], %160 {strides = array<i32>} : memref<2x2x32xf32, #tpu.memory_space<vmem>>, vector<1x2x32xf32>,
    %c1_77 = arith.constant 1 : index
    %c0_78 = arith.constant 0 : index
    %c0_79 = arith.constant 0 : index
    %161 = vector.load %arg8[%c1_77, %c0_78, %c0_79] : memref<2x2x32xf32, #tpu.memory_space<vmem>>, vector<1x2x32xf32>
    %162 = vector.shape_cast %161 : vector<1x2x32xf32> to vector<2x32xf32>
    %163 = vector.shape_cast %137 : vector<2x32xf32> to vector<1x2x32xf32>
    tpu.vector_store %arg8[%c1_77, %c0_78, %c0_79], %163 {strides = array<i32>} : memref<2x2x32xf32, #tpu.memory_space<vmem>>, vector<1x2x32xf32>,
    return
  }
}

</mosaic_0001>

<bundles_post_ra>
// kernel: decoder_forward.1
= control target key start
LH: loop header
LB: loop body
LE: loop exit
PB: predicated region body
PF: predicated region fallthrough
CT: control target
= control target key end

     0   :  { %14 = vsyncpa [#allocation4], 0  ;;  %s2105_s0 = inlined_call_operand.vmem [shape: s32[2], index: 0, kind: input, shape index: {}]   ;;  %s2106_s1 = inlined_call_operand.vmem [shape: f32[2,2,32], index: 1, kind: input, shape index: {}]   ;;  %s2107_s2 = inlined_call_operand.vmem [shape: f32[2,2,32], index: 2, kind: input, shape index: {}]   ;;  %s2108_s3 = inlined_call_operand.vmem [shape: f32[2,8,32], index: 3, kind: input, shape index: {}]   ;;  %s2109_s4 = inlined_call_operand.vmem [shape: f32[176,128], index: 4, kind: input, shape index: {}]   ;;  %s2110_s5 = inlined_call_operand.vmem [shape: f32[216,32], index: 5, kind: input, shape index: {}]   ;;  %s2111_s6 = inlined_call_operand.hbm [shape: f32[2,32], index: 6, kind: output, shape index: {0}]   ;;  %s2112_s7 = inlined_call_operand.hbm [shape: f32[2,2,32], index: 7, kind: output, shape index: {1}]   ;;  %s2113_s8 = inlined_call_operand.hbm [shape: f32[2,2,32], index: 8, kind: output, shape index: {2}]  }
   0x1   :  { %15 = vsyncpa [#allocation3], 0 }
   0x2   :  { %16 = vsyncpa [#allocation7], 0  ;;  %s23_s29 = sshll.u32 %s2105_s0, 4  ;;  %s24_s29 = int_to_ptr.vmem [resolvable:$true] %s23_s29 }
   0x3   :  { %s1633_s30 = scalar_lea.vmem %s24_s29, 16  ;;  %p1638_p1 = scmp.lt.s32.totalorder %s24_s29, %s24_s29 }
   0x4   :  { %p1634_p0 = scmp.ne.s32.totalorder %s24_s29, %s1633_s30  ;;  %p1639_p2 = scmp.lt.s32.totalorder %s1633_s30, %s1633_s30 }
   0x6   :  { %p1640_p3 = por %p1639_p2, %p1638_p1 }
   0x8   :  { %p1641_p4 = pnand %p1640_p3, %p1634_p0 }
   0xa   :  { %1644 = shalt.err (!%p1641_p4)
}
   0xb   :  { %s1717_s9 = smov [#allocation2]  }
   0xc   :  { %26 = dma.vmem_to_smem %s24_s29, 16, %s1717_s9, [#allocation4]  }
   0xd   :  { %1711 = dma.done.wait [#allocation4], 16  }
   0xe   :  { %1712 = vsyncadd [#allocation4], 4294967280 }
   0xf   :  { %40 = sfence }
  0x10   :  { %v53_v0 = vld [vmem:[%s2110_s5] sm:$0xff]  ;;  %v54_v1 = vld [vmem:[%s2110_s5 + $0x8] sm:$0xff]  ;;  %v55_v2 = vld [vmem:[%s2110_s5 + $0x10] sm:$0xff]  ;;  %v1718_v3 = vmov 0.0|0.0   ;;  %vm1719_vm0 = vmmov 0   ;;  %v1720_v6 = vmov 0.0   ;;  %v131_v20 = vlaneseq }
  0x11   :  { %1516 = vmatprep.subr.bf16.mxu0 %v1718_v3  ;;  %v1517_v4 = vpack.c.bf16 %v54_v1, %v53_v0  ;;  %v56_v5 = vld [vmem:[%s2110_s5 + $0x18] sm:$0xff]  ;;  %1381 = vmatprep.mubr.msk.f32.mxu0 %vm1719_vm0, %v1720_v6  ;;  %v47_v8 = vld [vmem:[%s2110_s5 + $0xa0] sm:$0xff]  ;;  %v42_v10 = vld [vmem:[%s2110_s5 + $0x28] sm:$0xff]  ;;  %vm57_vm1 = vcmask 261120   ;;  %s133_s13 = sld [smem:[#allocation2]]  ;;  %vm519_vm4 = vcmask 1040384  }
  0x12   :  { %1522 = vmatprep.subr.bf16.mxu1 %v1718_v3  ;;  %1392 = vmatprep.mubr.msk.f32.mxu1 %vm1719_vm0, %v1720_v6  ;;  %v1520_v7 = vpack.c.bf16 %v56_v5, %v55_v2  ;;  %v41_v9 = vld [vmem:[%s2110_s5 + $0x20] sm:$0xff]  ;;  %v48_v11 = vld [vmem:[%s2110_s5 + $0xa8] sm:$0xff]  ;;  %v43_v15 = vld [vmem:[%s2110_s5 + $0x30] sm:$0xff]  ;;  %v1852_v23 = vand.u32 127, %v131_v20  ;;  %v213_v29 = vshrl.u32 %v131_v20, 7  ;;  %s1721_s24 = smov 64  }
  0x13   :  { %1518 = vmatpush3.bf16.msra.mxu0 %v1517_v4  ;;  %v1523_v12 = vpack.c.bf16 %v48_v11, %v47_v8  ;;  %v1810_v13 = vld [vmem:[%s2106_s1 + $0x2] sm:$0x3]  ;;  %v1529_v14 = vpack.c.bf16 %v42_v10, %v41_v9  ;;  %v44_v16 = vld [vmem:[%s2110_s5 + $0x38] sm:$0xff]  ;;  %v1839_v19 = vld [vmem:[%s2108_s3 + $0x8] sm:$0xff]  ;;  %s1722_s27 = smov 32   ;;  %vm1218_vm8 = vcmask 254976  }
  0x14   :  { %1519 = vmatprep.subr.bf16.mxu0 %v1718_v3  ;;  %v1532_v17 = vpack.c.bf16 %v44_v16, %v43_v15  ;;  %v1828_v18 = vld [vmem:[%s2108_s3] sm:$0xff]  ;;  %v49_v21 = vld [vmem:[%s2110_s5 + $0xb0] sm:$0xff]  ;;  %v50_v22 = vld [vmem:[%s2110_s5 + $0xb8] sm:$0xff]  ;;  %s1289_s3 = sld [smem:[#allocation2 + $0x1]]  ;;  %v214_v30 = vsub.s32 0, %v213_v29  ;;  %v410_v31 = vsub.s32 1, %v213_v29 }
  0x15   :  { %1524 = vmatpush3.bf16.msra.mxu1 %v1523_v12  ;;  %v1526_v24 = vpack.c.bf16 %v50_v22, %v49_v21  ;;  %v1287_v36 = vld [vmem:[%s2110_s5 + $0xc0] ss:$0 sm:$0xff]  ;;  %v1288_v45 = vld [vmem:[%s2110_s5 + $0xc8] ss:$0 sm:$0xff]  ;;  %v531_v54 = vld [vmem:[%s2109_s4 + $0x10] sm:$0xff]  ;;  %vm526_vm5 = vcmp.ge.s32.totalorder %v1852_v23, 64 }
  0x16   :  { %1525 = vmatprep.subr.bf16.mxu1 %v1718_v3  ;;  %v529_v52 = vld [vmem:[%s2109_s4] sm:$0xff]  ;;  %v530_v53 = vld [vmem:[%s2109_s4 + $0x8] sm:$0xff]  ;;  %v532_v56 = vld [vmem:[%s2109_s4 + $0x18] sm:$0xff]  ;;  %vm527_vm6 = vcmp.lt.s32.totalorder %v1852_v23, 96  ;;  %s1723_s22 = smov 96  }
  0x17   :  { %1521 = vmatpush3.bf16.msra.mxu0 %v1520_v7  ;;  %v134_v25 = vstv %s133_s13  ;;  %v1553_v55 = vpack.c.bf16 %v530_v53, %v529_v52  ;;  %v533_v57 = vld [vmem:[%s2109_s4 + $0x20] sm:$0xff]  ;;  %v1556_v58 = vpack.c.bf16 %v532_v56, %v531_v54  ;;  %v534_v59 = vld [vmem:[%s2109_s4 + $0x28] sm:$0xff]  ;;  %v535_v61 = vld [vmem:[%s2109_s4 + $0x30] sm:$0xff] }
  0x18   :  { %1528 = vmatprep.subr.bf16.mxu0 %v1718_v3  ;;  %vm135_vm2 = vcmp.eq.s32.totalorder %v1852_v23, %v134_v25  ;;  %v1547_v60 = vpack.c.bf16 %v534_v59, %v533_v57  ;;  %v536_v62 = vld [vmem:[%s2109_s4 + $0x38] sm:$0xff]  ;;  %v800_v2 = vld [vmem:[%s2109_s4 + $0x80] sm:$0xff]  ;;  %v801_v4 = vld [vmem:[%s2109_s4 + $0x88] sm:$0xff] }
  0x19   :  { %1527 = vmatpush3.bf16.msra.mxu1 %v1526_v24  ;;  %v1284_v26 = vsel %vm135_vm2, 1.0, %v1720_v6  ;;  %v1550_v63 = vpack.c.bf16 %v536_v62, %v535_v61  ;;  %v1565_v8 = vpack.c.bf16 %v801_v4, %v800_v2  ;;  %v802_v10 = vld [vmem:[%s2109_s4 + $0x90] sm:$0xff]  ;;  %v803_v11 = vld [vmem:[%s2109_s4 + $0x98] sm:$0xff]  ;;  %v988_v15 = vld [vmem:[%s2110_s5 + $0x60] sm:$0xff] }
  0x1a   :  { %1382 = vmatmul.mubr.msk.f32.vlgmr.msra.gmra.mrb[0].mxu0 %vm57_vm1, %v1810_v13  ;;  %1534 = vmatprep.subr.bf16.mxu1 %v1718_v3  ;;  %v329_v27 = vstv %s1289_s3  ;;  %v989_v16 = vld [vmem:[%s2110_s5 + $0x68] sm:$0xff]  ;;  %v990_v20 = vld [vmem:[%s2110_s5 + $0x70] sm:$0xff]  ;;  %v991_v21 = vld [vmem:[%s2110_s5 + $0x78] sm:$0xff] }
  0x1b   :  { %1530 = vmatpush3.bf16.msra.mxu0 %v1529_v14  ;;  %1403 = vmatprep.mubr.msk.f32.mxu0 %vm1719_vm0, %v1720_v6  ;;  %vm330_vm3 = vcmp.eq.s32.totalorder %v1852_v23, %v329_v27  ;;  %v1580_v22 = vpack.c.bf16 %v991_v21, %v990_v20  ;;  %v685_v21 = vld [vmem:[%s2109_s4 + $0x50] sm:$0xff]  ;;  %vm1997_vm7 = vmand %vm526_vm5, %vm527_vm6 }
  0x1c   :  { %1531 = vmatprep.subr.bf16.mxu0 %v1718_v3  ;;  %1393 = vmatmul.mubr.msk.f32.vlgmr.msra.gmra.mrb[0].mxu1 %vm57_vm1, %v1284_v26  ;;  %v1290_v28 = vsel %vm330_vm3, 1.0, %v1720_v6 }
  0x1d   :  { %1536 = vmatpush3.bf16.msra.mxu1 %v1523_v12  ;;  %1414 = vmatprep.mubr.msk.f32.mxu1 %vm1719_vm0, %v1720_v6 }
  0x1e   :  { %1537 = vmatprep.subr.bf16.mxu1 %v1718_v3 }
  0x1f   :  { %1533 = vmatpush3.bf16.msra.mxu0 %v1532_v17 }
  0x20   :  { %1540 = vmatprep.subr.bf16.mxu0 %v1718_v3 }
  0x21   :  { %1539 = vmatpush3.bf16.msra.mxu1 %v1526_v24 }
  0x22   :  { %1404 = vmatmul.mubr.msk.f32.vlgmr.msra.gmra.mrb[2].mxu0 %vm57_vm1, %v1828_v18  ;;  %1546 = vmatprep.subr.bf16.mxu1 %v1718_v3 }
  0x23   :  { %1542 = vmatpush3.bf16.msra.mxu0 %v1529_v14  ;;  %1425 = vmatprep.mubr.msk.f32.mxu0 %vm1719_vm0, %v1720_v6  ;;  %v1568_v14 = vpack.c.bf16 %v803_v11, %v802_v10  ;;  %v684_v10 = vld [vmem:[%s2109_s4 + $0x48] sm:$0xff] }
  0x24   :  { %1543 = vmatprep.subr.bf16.mxu0 %v1718_v3  ;;  %1415 = vmatmul.mubr.msk.f32.vlgmr.msra.gmra.mrb[2].mxu1 %vm57_vm1, %v1290_v28  ;;  %v1138_v11 = vld [vmem:[%s2110_s5 + $0x88] sm:$0xff] }
  0x25   :  { %1436 = vmatprep.mubr.msk.f32.mxu1 %vm1719_vm0, %v1720_v6  ;;  %1548 = vmatpush3.bf16.msra.mxu1 %v1547_v60 }
  0x26   :  { %1549 = vmatprep.subr.bf16.mxu1 %v1718_v3 }
  0x27   :  { %1545 = vmatpush3.bf16.msra.mxu0 %v1532_v17  ;;  %v1577_v17 = vpack.c.bf16 %v989_v16, %v988_v15 }
  0x28   :  { %1552 = vmatprep.subr.bf16.mxu0 %v1718_v3 }
  0x29   :  { %1551 = vmatpush3.bf16.msra.mxu1 %v1550_v63 }
  0x2a   :  { %1426 = vmatmul.mubr.msk.f32.vlgmr.msra.gmra.mrb[4].mxu0 %vm57_vm1, %v1839_v19  ;;  %1558 = vmatprep.subr.bf16.mxu1 %v1718_v3 }
  0x2b   :  { %1447 = vmatprep.mubr.msk.f32.mxu0 %vm1719_vm0, %v1720_v6  ;;  %1554 = vmatpush3.bf16.msra.mxu0 %v1553_v55 }
  0x2c   :  { %1555 = vmatprep.subr.bf16.mxu0 %v1718_v3 }
  0x2f   :  { %1557 = vmatpush3.bf16.msra.mxu0 %v1556_v58 }
  0x30   :  { %1564 = vmatprep.subr.bf16.mxu0 %v1718_v3 }
  0xed   :  { %v127_v32 = vpop.f32.mrb[0].mxu0 }
  0xee   :  { %v215_v33 = vrot.slane %v127_v32, %v214_v30  ;;  %v411_v34 = vrot.slane %v127_v32, %v410_v31  ;;  %v1383_v35 = vpop.f32.mrb[1].mxu0 }
  0xef   :  { %v207_v0 = vpop.f32.mrb[0].mxu1 }
  0xf0   :  { %v1394_v1 = vpop.f32.mrb[1].mxu1 }
  0xf5   :  { %v285_v37 = vpop.f32.mrb[2].mxu0 }
  0xf6   :  { %v286_v38 = vadd.f32 %v285_v37, %v215_v33  ;;  %v1405_v39 = vpop.f32.mrb[3].mxu0 }
  0xf7   :  { %v402_v5 = vpop.f32.mrb[2].mxu1 }
  0xf8   :  { %v293_v40 = vadd.f32 %v1287_v36, %v286_v38  ;;  %v517_v7 = vrot.slane %v402_v5, 7  ;;  %v1416_v9 = vpop.f32.mrb[3].mxu1 }
  0xfa   :  { %1605 = vtanh.f32 %v293_v40  ;;  %v1916_v12 = vsel %vm519_vm4, %v207_v0, %v517_v7 }
  0xfb   :  { %1448 = vmatmul.mubr.msk.f32.vlgmr.msra.gmra.mrb[6].mxu0 %vm57_vm1, %v1916_v12 }
  0xfc   :  { %1566 = vmatpush3.bf16.msra.mxu0 %v1565_v8  ;;  %1469 = vmatprep.mubr.msk.f32.mxu0 %vm1719_vm0, %v1720_v6 }
  0xfd   :  { %v481_v41 = vpop.f32.mrb[4].mxu0  ;;  %1567 = vmatprep.subr.bf16.mxu0 %v1718_v3 }
  0xfe   :  { %v482_v42 = vadd.f32 %v481_v41, %v411_v34  ;;  %v1427_v43 = vpop.f32.mrb[5].mxu0 }
 0x100   :  { %v485_v44 = vadd.f32 %v1287_v36, %v482_v42  ;;  %1569 = vmatpush3.bf16.msra.mxu0 %v1568_v14 }
 0x101   :  { %1576 = vmatprep.subr.bf16.mxu0 %v1718_v3 }
 0x102   :  { %1607 = vtanh.f32 %v485_v44 }
 0x103   :  { %1470 = vmatmul.mubr.msk.f32.vlgmr.msra.gmra.mrb[8].mxu0 %vm57_vm1, %v1810_v13 }
 0x104   :  { %v1606_v46 = vpop.eup %1605  ;;  %1578 = vmatpush3.bf16.msra.mxu0 %v1577_v17  ;;  %1491 = vmatprep.mubr.msk.f32.mxu0 %vm1719_vm0, %v1720_v6 }
 0x105   :  { %v299_v47 = vmul.f32 %v1606_v46, %v1288_v45  ;;  %1579 = vmatprep.subr.bf16.mxu0 %v1718_v3 }
 0x107   :  { %v300_v48 = vsel %vm57_vm1, %v299_v47, 0.0 }
 0x108   :  { %301 = vadd.xlane.f32.xlu0 %v300_v48  ;;  %1581 = vmatpush3.bf16.msra.mxu0 %v1580_v22  ;;  %v686_v22 = vld [vmem:[%s2109_s4 + $0x58] sm:$0xff] }
 0x109   :  { %1588 = vmatprep.subr.bf16.mxu0 %v1718_v3 }
 0x10c   :  { %v1608_v49 = vpop.eup %1607 }
 0x10d   :  { %v487_v50 = vmul.f32 %v1608_v49, %v1288_v45 }
 0x10f   :  { %v488_v51 = vsel %vm57_vm1, %v487_v50, 0.0 }
 0x110   :  { %489 = vadd.xlane.f32.xlu0 %v488_v51 }
 0x195   :  { %v302_v24 = vpop.xlane.xlu0 %301 }
 0x196   :  { %v303_v25 = vrot.slane %v302_v24, 4 }
 0x198   :  { %v304_v26 = vmax.f32 %v302_v24, %v303_v25  ;;  %v1140_v25 = vld [vmem:[%s2110_s5 + $0x98] sm:$0xff] }
 0x19a   :  { %v305_v27 = vrot.slane %v304_v26, 2 }
 0x19c   :  { %v306_v28 = vmax.f32 %v304_v26, %v305_v27  ;;  %v1562_v27 = vpack.c.bf16 %v686_v22, %v685_v21 }
 0x19d   :  { %v490_v29 = vpop.xlane.xlu0 %489 }
 0x19e   :  { %v307_v30 = vrot.slane %v306_v28, 1  ;;  %v491_v31 = vrot.slane %v490_v29, 4 }
 0x1a0   :  { %v308_v32 = vmax.f32 %v306_v28, %v307_v30  ;;  %v492_v13 = vmax.f32 %v490_v29, %v491_v31 }
 0x1a2   :  { %v309_v33 = vsub.f32 %v302_v24, %v308_v32  ;;  %v493_v34 = vrot.slane %v492_v13, 2  ;;  %v1139_v24 = vld [vmem:[%s2110_s5 + $0x90] sm:$0xff] }
 0x1a3   :  { %v1592_v28 = vpack.c.bf16 %v1140_v25, %v1139_v24  ;;  %v984_v25 = vld [vmem:[%s2110_s5 + $0x40] sm:$0xff] }
 0x1a4   :  { %v310_v35 = vmul.f32 1.442695, %v309_v33  ;;  %v494_v36 = vmax.f32 %v492_v13, %v493_v34 }
 0x1a6   :  { %1609 = vpow2.f32 %v310_v35  ;;  %v495_v37 = vrot.slane %v494_v36, 1 }
 0x1a8   :  { %v496_v38 = vmax.f32 %v494_v36, %v495_v37 }
 0x1aa   :  { %v497_v39 = vsub.f32 %v490_v29, %v496_v38  ;;  %v522_v29 = vld [vmem:[%s2106_s1] sm:$0x3]  ;;  %s1724_s1 = smov [#allocation6]  }
 0x1ab   :  { %s1251_s23 = sshll.u32 %s1724_s1, 4  ;;  %s1252_s23 = int_to_ptr.vmem [resolvable:$true] %s1251_s23 }
 0x1ac   :  { %v498_v40 = vmul.f32 1.442695, %v497_v39  ;;  %v1298_v39 = vld [vmem:[%s2109_s4 + $0xa0] ss:$0 sm:$0xff]  ;;  %p1650_p6 = scmp.lt.s32.totalorder %s1252_s23, %s1252_s23 }
 0x1ae   :  { %1611 = vpow2.f32 %v498_v40 }
 0x1b0   :  { %v1610_v41 = vpop.eup %1609 }
 0x1b1   :  { %v312_v42 = vrot.slane %v1610_v41, 4 }
 0x1b3   :  { %v313_v43 = vadd.f32 %v1610_v41, %v312_v42 }
 0x1b5   :  { %v314_v44 = vrot.slane %v313_v43, 2 }
 0x1b7   :  { %v315_v45 = vadd.f32 %v314_v44, %v313_v43 }
 0x1b8   :  { %v1612_v46 = vpop.eup %1611 }
 0x1b9   :  { %v500_v47 = vrot.slane %v1612_v46, 4  ;;  %v316_v48 = vrot.slane %v315_v45, 1 }
 0x1bb   :  { %v501_v49 = vadd.f32 %v1612_v46, %v500_v47  ;;  %v317_v50 = vadd.f32 %v316_v48, %v315_v45 }
 0x1bd   :  { %v502_v51 = vrot.slane %v501_v49, 2  ;;  %1613 = vrcp.f32 %v317_v50 }
 0x1bf   :  { %v503_v52 = vadd.f32 %v502_v51, %v501_v49  ;;  %v523_v51 = vld [vmem:[%s2107_s2] sm:$0x3] }
 0x1c1   :  { %v504_v53 = vrot.slane %v503_v52, 1 }
 0x1c3   :  { %v505_v54 = vadd.f32 %v504_v53, %v503_v52 }
 0x1c5   :  { %1615 = vrcp.f32 %v505_v54 }
 0x1c7   :  { %v1614_v55 = vpop.eup %1613 }
 0x1c8   :  { %v319_v56 = vmul.f32 %v1614_v55, %v1610_v41 }
 0x1ca   :  { %v320_v57 = vmul.f32 %v319_v56, %v1828_v18  ;;  %v683_v18 = vld [vmem:[%s2109_s4 + $0x40] sm:$0xff] }
 0x1cb   :  { %v1559_v17 = vpack.c.bf16 %v684_v10, %v683_v18 }
 0x1cc   :  { %v321_v58 = vsel %vm57_vm1, %v320_v57, 0.0  ;;  %v796_v57 = vld [vmem:[%s2109_s4 + $0x60] sm:$0xff] }
 0x1cd   :  { %v322_v59 = vrot.slane %v321_v58, 4 }
 0x1ce   :  { %v679_v30 = vpop.f32.mrb[6].mxu0 }
 0x1cf   :  { %v1616_v60 = vpop.eup %1615  ;;  %v323_v61 = vadd.f32 %v322_v59, %v321_v58  ;;  %v1449_v31 = vpop.f32.mrb[7].mxu0  ;;  %v797_v58 = vld [vmem:[%s2109_s4 + $0x68] sm:$0xff]  ;;  %v798_v59 = vld [vmem:[%s2109_s4 + $0x70] sm:$0xff] }
 0x1d0   :  { %v507_v62 = vmul.f32 %v1616_v60, %v1612_v46  ;;  %v1571_v60 = vpack.c.bf16 %v797_v58, %v796_v57 }
 0x1d1   :  { %v324_v0 = vrot.slane %v323_v61, 2 }
 0x1d2   :  { %v508_v63 = vmul.f32 %v1839_v19, %v507_v62  ;;  %v1137_v19 = vld [vmem:[%s2110_s5 + $0x80] sm:$0xff] }
 0x1d3   :  { %v325_v4 = vadd.f32 %v324_v0, %v323_v61  ;;  %v1589_v20 = vpack.c.bf16 %v1138_v11, %v1137_v19  ;;  %v799_v61 = vld [vmem:[%s2109_s4 + $0x78] sm:$0xff] }
 0x1d4   :  { %v509_v1 = vsel %vm57_vm1, %v508_v63, 0.0  ;;  %v1574_v62 = vpack.c.bf16 %v799_v61, %v798_v59 }
 0x1d5   :  { %v510_v2 = vrot.slane %v509_v1, 4  ;;  %v326_v8 = vrot.slane %v325_v4, 1 }
 0x1d6   :  { %v870_v32 = vpop.f32.mrb[8].mxu0 }
 0x1d7   :  { %v511_v5 = vadd.f32 %v510_v2, %v509_v1  ;;  %v327_v15 = vadd.f32 %v326_v8, %v325_v4  ;;  %v1471_v13 = vpop.f32.mrb[9].mxu0 }
 0x1d9   :  { %v512_v7 = vrot.slane %v511_v5, 2 }
 0x1db   :  { %v513_v9 = vadd.f32 %v512_v7, %v511_v5  ;;  %v1302_v5 = vld [vmem:[%s2109_s4 + $0xa8] ss:$0 sm:$0xff] }
 0x1dd   :  { %v514_v14 = vrot.slane %v513_v9, 1 }
 0x1df   :  { %v515_v16 = vadd.f32 %v514_v14, %v513_v9 }
 0x1e1   :  { %v521_v26 = vsel %vm519_vm4, %v327_v15, %v515_v16 }
 0x1e2   :  { %1437 = vmatmul.mubr.msk.f32.vlgmr.msra.gmra.mrb[4].mxu1 %vm57_vm1, %v521_v26  ;;  %1492 = vmatmul.mubr.msk.f32.vlgmr.msra.gmra.mrb[10].mxu0 %vm57_vm1, %v521_v26  ;;  %v985_v26 = vld [vmem:[%s2110_s5 + $0x48] sm:$0xff] }
 0x1e3   :  { %1560 = vmatpush3.bf16.msra.mxu1 %v1559_v17  ;;  %1590 = vmatpush3.bf16.msra.mxu0 %v1589_v20 }
 0x1e4   :  { %1561 = vmatprep.subr.bf16.mxu1 %v1718_v3  ;;  %1591 = vmatprep.subr.bf16.mxu0 %v1718_v3 }
 0x1e5   :  { %1458 = vmatprep.mubr.msk.f32.mxu1 %vm1719_vm0, %v1720_v6  ;;  %1513 = vmatprep.mubr.msk.f32.mxu0 %vm1719_vm0, %v1720_v6 }
 0x1e7   :  { %1563 = vmatpush3.bf16.msra.mxu1 %v1562_v27  ;;  %1593 = vmatpush3.bf16.msra.mxu0 %v1592_v28  ;;  %v986_v27 = vld [vmem:[%s2110_s5 + $0x50] sm:$0xff]  ;;  %v1583_v28 = vpack.c.bf16 %v985_v26, %v984_v25 }
 0x1e8   :  { %1570 = vmatprep.subr.bf16.mxu1 %v1718_v3 }
 0x1ea   :  { %1459 = vmatmul.mubr.msk.f32.vlgmr.msra.gmra.mrb[6].mxu1 %vm57_vm1, %v522_v29  ;;  %1514 = vmatmul.mubr.msk.f32.vlgmr.msra.gmra.mrb[12].mxu0 %vm57_vm1, %v1916_v12  ;;  %v987_v29 = vld [vmem:[%s2110_s5 + $0x58] sm:$0xff] }
 0x1eb   :  { %1480 = vmatprep.mubr.msk.f32.mxu1 %vm1719_vm0, %v1720_v6  ;;  %1572 = vmatpush3.bf16.msra.mxu1 %v1571_v60 }
 0x1ec   :  { %1573 = vmatprep.subr.bf16.mxu1 %v1718_v3 }
 0x1ef   :  { %1575 = vmatpush3.bf16.msra.mxu1 %v1574_v62 }
 0x1f0   :  { %1582 = vmatprep.subr.bf16.mxu1 %v1718_v3 }
 0x2b5   :  { %v606_v33 = vpop.f32.mrb[4].mxu1  ;;  %v1988_v34 = vpop.f32.mrb[10].mxu0 }
 0x2b6   :  { %v680_v35 = vadd.f32 %v679_v30, %v606_v33  ;;  %v1438_v36 = vpop.f32.mrb[5].mxu1  ;;  %v1493_v37 = vpop.f32.mrb[11].mxu0  ;;  %v1586_v30 = vpack.c.bf16 %v987_v29, %v986_v27 }
 0x2bd   :  { %v756_v38 = vpop.f32.mrb[6].mxu1  ;;  %v1993_v40 = vpop.f32.mrb[12].mxu0 }
 0x2be   :  { %v760_v12 = vadd.f32 %v756_v38, %v680_v35  ;;  %v1460_v41 = vpop.f32.mrb[7].mxu1  ;;  %v1515_v42 = vpop.f32.mrb[13].mxu0 }
 0x2c0   :  { %v766_v43 = vadd.f32 %v1298_v39, %v760_v12 }
 0x2c2   :  { %v1299_v44 = vmul.f32 -1.442695, %v766_v43 }
 0x2c4   :  { %1617 = vpow2.f32 %v1299_v44 }
 0x2c5   :  { %1619 = vtanh.f32 %v766_v43 }
 0x2ce   :  { %v1618_v45 = vpop.eup %1617 }
 0x2cf   :  { %v771_v46 = vadd.f32 1.0, %v1618_v45  ;;  %v1620_v48 = vpop.eup %1619 }
 0x2d1   :  { %1621 = vrcp.f32 %v771_v46 }
 0x2db   :  { %v1622_v49 = vpop.eup %1621 }
 0x2dc   :  { %v774_v50 = vsel %vm1997_vm7, %v1620_v48, %v1622_v49 }
 0x2dd   :  { %781 = vrot.lane.b32.xlu1 %v774_v50, %s1721_s24 }
 0x2e1   :  { %776 = vrot.lane.b32.xlu1 %v523_v51, %s1722_s27 }
 0x34f   :  { %v782_v23 = vpop.permute.xlu1 %781 }
 0x350   :  { %v784_v52 = vmul.f32 %v782_v23, %v774_v50 }
 0x352   :  { %786 = vrot.lane.b32.xlu0 %v784_v52, %s1722_s27 }
 0x353   :  { %v777_v53 = vpop.permute.xlu1 %776 }
 0x354   :  { %v779_v54 = vmul.f32 %v777_v53, %v774_v50 }
 0x3c4   :  { %v787_v55 = vpop.permute.xlu0 %786 }
 0x3c5   :  { %v789_v56 = vadd.f32 %v787_v55, %v779_v54 }
 0x3c7   :  { %1623 = vtanh.f32 %v789_v56 }
 0x3d1   :  { %v1624_v63 = vpop.eup %1623 }
 0x3d2   :  { %792 = vrot.lane.b32.xlu1 %v1624_v63, %s1721_s24 }
 0x444   :  { %v793_v0 = vpop.permute.xlu1 %792 }
 0x445   :  { %v795_v1 = vmul.f32 %v793_v0, %v774_v50 }
 0x447   :  { %875 = vrot.lane.b32.xlu1 %v795_v1, %s1722_s27 }
 0x4b9   :  { %v876_v2 = vpop.permute.xlu1 %875 }
 0x4ba   :  { %1221 = vst.msk [vmem:[#allocation6] sm:$0x3] %vm1218_vm8, %v876_v2  ;;  %1481 = vmatmul.mubr.msk.f32.vlgmr.msra.gmra.mrb[8].mxu1 %vm57_vm1, %v876_v2 }
 0x4bb   :  { %1502 = vmatprep.mubr.msk.f32.mxu1 %vm1719_vm0, %v1720_v6  ;;  %v1294_v6 = vld [vmem:[%s2107_s2 + $0x2] sm:$0x3]  ;;  %1584 = vmatpush3.bf16.msra.mxu1 %v1583_v28 }
 0x4bc   :  { %1585 = vmatprep.subr.bf16.mxu1 %v1718_v3 }
 0x4bf   :  { %1587 = vmatpush3.bf16.msra.mxu1 %v1586_v30 }
 0x58d   :  { %v945_v4 = vpop.f32.mrb[8].mxu1 }
 0x58e   :  { %v946_v7 = vadd.f32 %v945_v4, %v870_v32  ;;  %v1482_v8 = vpop.f32.mrb[9].mxu1 }
 0x590   :  { %v954_v9 = vadd.f32 %v1302_v5, %v946_v7 }
 0x592   :  { %v1303_v18 = vmul.f32 -1.442695, %v954_v9 }
 0x594   :  { %1625 = vpow2.f32 %v1303_v18 }
 0x595   :  { %1627 = vtanh.f32 %v954_v9 }
 0x59e   :  { %v1626_v10 = vpop.eup %1625 }
 0x59f   :  { %v959_v19 = vadd.f32 1.0, %v1626_v10  ;;  %v1628_v11 = vpop.eup %1627 }
 0x5a1   :  { %1629 = vrcp.f32 %v959_v19 }
 0x5ab   :  { %v1630_v14 = vpop.eup %1629 }
 0x5ac   :  { %v962_v15 = vsel %vm1997_vm7, %v1628_v11, %v1630_v14 }
 0x5ad   :  { %969 = vrot.lane.b32.xlu1 %v962_v15, %s1721_s24 }
 0x5b1   :  { %964 = vrot.lane.b32.xlu1 %v1294_v6, %s1722_s27 }
 0x61f   :  { %v970_v16 = vpop.permute.xlu1 %969 }
 0x620   :  { %v972_v17 = vmul.f32 %v970_v16, %v962_v15 }
 0x622   :  { %974 = vrot.lane.b32.xlu1 %v972_v17, %s1722_s27 }
 0x623   :  { %v965_v20 = vpop.permute.xlu1 %964 }
 0x624   :  { %v967_v21 = vmul.f32 %v965_v20, %v962_v15 }
 0x694   :  { %v975_v22 = vpop.permute.xlu1 %974 }
 0x695   :  { %v977_v24 = vadd.f32 %v975_v22, %v967_v21 }
 0x697   :  { %1631 = vtanh.f32 %v977_v24 }
 0x6a1   :  { %v1632_v31 = vpop.eup %1631 }
 0x6a2   :  { %980 = vrot.lane.b32.xlu1 %v1632_v31, %s1721_s24  ;;  %s1645_s24 = scalar_lea.vmem %s1252_s23, 64 }
 0x6a3   :  { %p1646_p5 = scmp.ne.s32.totalorder %s1252_s23, %s1645_s24  ;;  %p1651_p7 = scmp.lt.s32.totalorder %s1645_s24, %s1645_s24 }
 0x6a5   :  { %p1652_p8 = por %p1651_p7, %p1650_p6 }
 0x6a6   :  { %1226 = vrot.lane.b32.xlu1 %v789_v56, %s1723_s22 }
 0x6a7   :  { %p1653_p9 = pnand %p1652_p8, %p1646_p5 }
 0x714   :  { %v981_v32 = vpop.permute.xlu1 %980 }
 0x715   :  { %v983_v13 = vmul.f32 %v981_v32, %v962_v15 }
 0x717   :  { %1063 = vrot.lane.b32.xlu0 %v983_v13, %s1722_s27 }
 0x718   :  { %v1227_v33 = vpop.permute.xlu1 %1226 }
 0x719   :  { %1229 = vst.msk [vmem:[#allocation8] sm:$0x3] %vm1218_vm8, %v1227_v33 }
 0x71b   :  { %1231 = vrot.lane.b32.xlu0 %v977_v24, %s1723_s22 }
 0x789   :  { %v1064_v35 = vpop.permute.xlu0 %1063 }
 0x78a   :  { %1224 = vst.msk [vmem:[#allocation6 + $0x2] sm:$0x3] %vm1218_vm8, %v1064_v35  ;;  %1503 = vmatmul.mubr.msk.f32.vlgmr.msra.gmra.mrb[10].mxu1 %vm57_vm1, %v1064_v35 }
 0x78d   :  { %v1232_v3 = vpop.permute.xlu0 %1231 }
 0x78e   :  { %1235 = vst.msk [vmem:[#allocation8 + $0x2] sm:$0x3] %vm1218_vm8, %v1232_v3 }
 0x78f   :  { %1656 = shalt.err (!%p1653_p9)
}
 0x790   :  { %s1657_s28 = scalar_lea.hbm %s2112_s7, 64 }
 0x791   :  { %p1658_p10 = scmp.ne.s32.totalorder %s2112_s7, %s1657_s28  ;;  %p1661_p11 = scmp.lt.u32.totalorder %s1657_s28, %s2112_s7 }
 0x793   :  { %p1663_p12 = pnand %p1661_p11, %p1658_p10 }
 0x795   :  { %1666 = shalt.err (!%p1663_p12)
}
 0x796   :  { %s1725_s11 = smov 2   ;;  %s1726_s0 = smov [#allocation8]  }
 0x797   :  { %1257 = dma.vmem_to_hbm [thread:$0]  %s1252_s23, 64, %s2112_s7, [#allocation7], %s1722_s27, %s1722_s27, %s1725_s11  }
 0x798   :  { %s1263_s14 = sshll.u32 %s1726_s0, 4  ;;  %s1264_s14 = int_to_ptr.vmem [resolvable:$true] %s1263_s14 }
 0x799   :  { %s1667_s15 = scalar_lea.vmem %s1264_s14, 64  ;;  %p1672_p0 = scmp.lt.s32.totalorder %s1264_s14, %s1264_s14 }
 0x79a   :  { %p1668_p13 = scmp.ne.s32.totalorder %s1264_s14, %s1667_s15  ;;  %p1673_p1 = scmp.lt.s32.totalorder %s1667_s15, %s1667_s15 }
 0x79c   :  { %p1674_p2 = por %p1673_p1, %p1672_p0 }
 0x79e   :  { %p1675_p3 = pnand %p1674_p2, %p1668_p13 }
 0x7a0   :  { %1678 = shalt.err (!%p1675_p3)
}
 0x7a1   :  { %s1679_s3 = scalar_lea.hbm %s2113_s8, 64 }
 0x7a2   :  { %p1680_p4 = scmp.ne.s32.totalorder %s2113_s8, %s1679_s3  ;;  %p1683_p5 = scmp.lt.u32.totalorder %s1679_s3, %s2113_s8 }
 0x7a4   :  { %p1685_p6 = pnand %p1683_p5, %p1680_p4 }
 0x7a6   :  { %1688 = shalt.err (!%p1685_p6)
}
 0x7a7   :  { %1269 = dma.vmem_to_hbm [thread:$0]  %s1264_s14, 64, %s2113_s8, [#allocation7], %s1722_s27, %s1722_s27, %s1725_s11  }
 0x7a8   :  { %v1307_v39 = vld [vmem:[%s2110_s5 + $0xd0] ss:$0 sm:$0xff]  ;;  %s1727_s1 = smov [#allocation5]  }
 0x7a9   :  { %s1242_s23 = sshll.u32 %s1727_s1, 4  ;;  %s1243_s23 = int_to_ptr.vmem [resolvable:$true] %s1242_s23 }
 0x7aa   :  { %s1689_s24 = scalar_lea.vmem %s1243_s23, 32  ;;  %p1694_p8 = scmp.lt.s32.totalorder %s1243_s23, %s1243_s23 }
 0x7ab   :  { %p1690_p7 = scmp.ne.s32.totalorder %s1243_s23, %s1689_s24  ;;  %p1695_p9 = scmp.lt.s32.totalorder %s1689_s24, %s1689_s24 }
 0x7ad   :  { %p1696_p10 = por %p1695_p9, %p1694_p8 }
 0x7af   :  { %p1697_p11 = pnand %p1696_p10, %p1690_p7 }
 0x85d   :  { %v1133_v36 = vpop.f32.mrb[10].mxu1 }
 0x85e   :  { %v1134_v37 = vadd.f32 %v1133_v36, %v1988_v34  ;;  %v1504_v38 = vpop.f32.mrb[11].mxu1 }
 0x860   :  { %v1211_v12 = vadd.f32 %v1993_v40, %v1134_v37 }
 0x862   :  { %v1217_v41 = vadd.f32 %v1307_v39, %v1211_v12 }
 0x864   :  { %1219 = vst.msk [vmem:[#allocation5] sm:$0x3] %vm1218_vm8, %v1217_v41 }
 0x865   :  { %1700 = shalt.err (!%p1697_p11)
}
 0x866   :  { %s1701_s25 = scalar_lea.hbm %s2111_s6, 32 }
 0x867   :  { %p1702_p12 = scmp.ne.s32.totalorder %s2111_s6, %s1701_s25  ;;  %p1705_p13 = scmp.lt.u32.totalorder %s1701_s25, %s2111_s6 }
 0x869   :  { %p1707_p0 = pnand %p1705_p13, %p1702_p12 }
 0x86b   :  { %1710 = shalt.err (!%p1707_p0)
}
 0x86c   :  { %1245 = dma.vmem_to_hbm [thread:$0]  %s1243_s23, 32, %s2111_s6, [#allocation3]  }
 0x86d   :  { %1713 = dma.done.wait [#allocation3], 32  }
 0x86e   :  { %1714 = vsyncadd [#allocation3], 4294967264 }
 0x86f   :  { %1715 = dma.done.wait [#allocation7], 128  }
 0x870   :  { %1716 = vsyncadd [#allocation7], 4294967168 }
 0x871   :  { %1279 = vsyncpa [#allocation3], 1 }
 0x872   :  { %1280 = vsyncpa [#allocation7], 1 }
 0x873   :  { %1281 = vsyncpa [#allocation4], 1 }

</bundles_post_ra>
